<compile_context>
chip_gen: v5e
topology: v5e:2x2
jax: 0.10.0
libtpu: 0.0.40
codegen_flags: <defaults>
</compile_context>

<pallas_src>
import functools
import math

import jax
import jax.numpy as jnp
from jax.experimental import pallas as pl
from jax.experimental.pallas import tpu as pltpu


def make_pos_encoding(max_len: int, dim_model: int, dtype=jnp.float32):
    """Builds the (max_len, 1, dim_model) sinusoidal table exactly like __init__."""
    positions = jnp.arange(max_len, dtype=jnp.float32)[:, None]            # (L, 1)
    division_term = jnp.exp(
        jnp.arange(0, dim_model, 2, dtype=jnp.float32) * (-math.log(10000.0) / dim_model)
    )                                                                      # (D/2,)
    pe = jnp.zeros((max_len, dim_model), dtype=jnp.float32)
    pe = pe.at[:, 0::2].set(jnp.sin(positions * division_term))
    pe = pe.at[:, 1::2].set(jnp.cos(positions * division_term))
    return pe[:, None, :].astype(dtype)                                    # (L, 1, D)


def _pos_enc_kernel(*refs, batch, train):
    if train:
        x_ref, pe_ref, mask_ref, o_ref = refs
    else:
        x_ref, pe_ref, o_ref = refs

    x = x_ref[...]                             # (ts, B*D)  lane-dense tile
    pe = pe_ref[...]                           # (ts, D)
    if batch > 1:
        # Broadcast over the batch axis: lane-wise copy of the small pe tile.
        pe = jnp.concatenate([pe] * batch, axis=-1)        # (ts, B*D)
    y = x + pe                                 # native dtype (bf16 stays bf16)
    if train:
        # mask is 0 or 1/(1-p), already in y.dtype -> single fused multiply.
        y = y * mask_ref[...]
    o_ref[...] = y


def _choose_seq_tile(seq_len, row_bytes, target_bytes=1 << 20):
    """Largest multiple-of-8 divisor of seq_len whose block is <= ~1 MiB."""
    best = None
    for ts in range(8, seq_len + 1, 8):
        if seq_len % ts == 0 and ts * row_bytes <= target_bytes:
            best = ts
    return best if best is not None else seq_len   # block == full dims is always legal


def positional_encoding_forward(x, pos_encoding, *, dropout_p=0.1, train=False,
                                rng=None, seq_tile=None):
    """x: (S, B, D); pos_encoding: (max_len, 1, D) with max_len >= S."""
    S, B, D = x.shape
    dtype = x.dtype
    itemsize = jnp.dtype(dtype).itemsize

    x2 = x.reshape(S, B * D)                                   # free view, lane-dense
    pe2 = pos_encoding[:S, 0, :].astype(dtype)                 # (S, D), no f32 upcast later

    ts = _choose_seq_tile(S, B * D * itemsize) if seq_tile is None else seq_tile
    assert S % ts == 0 and (ts % 8 == 0 or ts == S), "seq tile must align to sublanes"

    apply_dropout = bool(train) and float(dropout_p) > 0.0

    inputs = [x2, pe2]
    in_specs = [
        pl.BlockSpec((ts, B * D), lambda i: (i, 0)),           # token embeddings
        pl.BlockSpec((ts, D), lambda i: (i, 0)),               # pos-encoding rows
    ]

    if apply_dropout:
        if rng is None:
            raise ValueError("training-mode dropout requires an `rng` PRNG key")
        p = float(dropout_p)
        scale = 0.0 if p >= 1.0 else 1.0 / (1.0 - p)           # p==1 -> drop everything
        keep = jax.random.bernoulli(rng, 1.0 - min(p, 1.0), (S, B * D))
        mask = jnp.where(keep, scale, 0.0).astype(dtype)       # pre-scaled keep mask
        inputs.append(mask)
        in_specs.append(pl.BlockSpec((ts, B * D), lambda i: (i, 0)))

    kernel = functools.partial(_pos_enc_kernel, batch=B, train=apply_dropout)

    out2 = pl.pallas_call(
        kernel,
        out_shape=jax.ShapeDtypeStruct((S, B * D), dtype),
        grid=(S // ts,),
        in_specs=in_specs,
        out_specs=pl.BlockSpec((ts, B * D), lambda i: (i, 0)),
        compiler_params=pltpu.CompilerParams(
            dimension_semantics=("parallel",)),   # independent seq tiles -> both TCs on v7x
    )(*inputs)

    return out2.reshape(S, B, D)


if __name__ == "__main__":
    # Module hyper-params (synthetic, deterministic, small).
    dim_model, dropout_p, max_len = 32, 0.1, 16
    seq_len, batch = 8, 2

    key = jax.random.PRNGKey(0)
    x = jax.random.normal(key, (seq_len, batch, dim_model), dtype=jnp.float32)
    pos_encoding = make_pos_encoding(max_len, dim_model)       # (max_len, 1, D)

    ref = x + pos_encoding[:seq_len]

    # Eval mode (dropout is identity): exact match against the reference math.
    out_eval = jax.block_until_ready(
        positional_encoding_forward(x, pos_encoding, dropout_p=dropout_p, train=False))
    assert out_eval.shape == (seq_len, batch, dim_model)
    assert jnp.allclose(out_eval, ref, atol=1e-6, rtol=1e-6)

    # Training mode: inverted dropout -> every element is either 0 or ref/(1-p).
    out_train = jax.block_until_ready(
        positional_encoding_forward(x, pos_encoding, dropout_p=dropout_p, train=True,
                                    rng=jax.random.PRNGKey(1234)))
    assert out_train.shape == (seq_len, batch, dim_model)
    ref_scaled = ref / (1.0 - dropout_p)
    ok = (out_train == 0.0) | (
        jnp.abs(out_train - ref_scaled) <= 1e-5 * (1.0 + jnp.abs(ref_scaled)))
    assert bool(jnp.all(ok))

    print("KERNEL_OK")
</pallas_src>

<mosaic_0001>
module attributes {stable_mosaic.version = 11 : i64} {
  func.func @_pos_enc_kernel(%arg0: i32, %arg1: memref<8x64xf32, #tpu.memory_space<vmem>>, %arg2: memref<8x32xf32, #tpu.memory_space<vmem>>, %arg3: memref<8x64xf32, #tpu.memory_space<vmem>>) attributes {dimension_semantics = [#tpu.dimension_semantics<parallel>], iteration_bounds = array<i64: 1>, scalar_prefetch = 0 : i64, scratch_operands = 0 : i64, tpu.core_type = #tpu.core_type<tc>, window_params = [{transform_indices = @transform_0, window_bounds = array<i64: 8, 64>}, {transform_indices = @transform_1, window_bounds = array<i64: 8, 32>}, {transform_indices = @transform_2, window_bounds = array<i64: 8, 64>}]} {
    %c0 = arith.constant 0 : index
    %c0_0 = arith.constant 0 : index
    %0 = vector.load %arg1[%c0, %c0_0] : memref<8x64xf32, #tpu.memory_space<vmem>>, vector<8x64xf32>
    %c0_1 = arith.constant 0 : index
    %c0_2 = arith.constant 0 : index
    %1 = vector.load %arg2[%c0_1, %c0_2] : memref<8x32xf32, #tpu.memory_space<vmem>>, vector<8x32xf32>
    %2 = tpu.concatenate %1, %1 in 1 : vector<8x32xf32>, vector<8x32xf32> -> vector<8x64xf32>
    %3 = arith.addf %0, %2 : vector<8x64xf32>
    %c0_3 = arith.constant 0 : index
    %c0_4 = arith.constant 0 : index
    %4 = vector.load %arg3[%c0_3, %c0_4] : memref<8x64xf32, #tpu.memory_space<vmem>>, vector<8x64xf32>
    tpu.vector_store %arg3[%c0_3, %c0_4], %3 {strides = array<i32>} : memref<8x64xf32, #tpu.memory_space<vmem>>, vector<8x64xf32>,
    return
  }
  func.func @transform_0(%arg0: i32) -> (i32, i32) {
    %c0_i32 = arith.constant 0 : i32
    %c0_i32_0 = arith.constant 0 : i32
    return %arg0, %c0_i32 : i32, i32
  }
  func.func @transform_1(%arg0: i32) -> (i32, i32) {
    %c0_i32 = arith.constant 0 : i32
    %c0_i32_0 = arith.constant 0 : i32
    return %arg0, %c0_i32 : i32, i32
  }
  func.func @transform_2(%arg0: i32) -> (i32, i32) {
    %c0_i32 = arith.constant 0 : i32
    %c0_i32_0 = arith.constant 0 : i32
    return %arg0, %c0_i32 : i32, i32
  }
}

</mosaic_0001>

<bundles_post_ra>
// kernel: tpu_custom_call.1
= control target key start
LH: loop header
LB: loop body
LE: loop exit
PB: predicated region body
PF: predicated region fallthrough
CT: control target
= control target key end

     0   :  { %7 = vsyncpa [#allocation3], 0  ;;  %s179_s0 = inlined_call_operand.hbm [shape: f32[8,64], index: 0, kind: input, shape index: {}]   ;;  %s180_s1 = inlined_call_operand.hbm [shape: f32[8,32], index: 1, kind: input, shape index: {}]   ;;  %s181_s2 = inlined_call_operand.hbm [shape: f32[8,64], index: 2, kind: output, shape index: {}]  }
   0x1   :  { %8 = vsyncpa [#allocation6], 0 }
   0x2   :  { %9 = vsyncpa [#allocation4], 0  ;;  %s15_s11 = sshll.u32 %s179_s0, 4  ;;  %s151_s12 = smov [#allocation2]   ;;  %s16_s11 = int_to_ptr.hbm [resolvable:$true] %s15_s11 }
   0x3   :  { %s17_s13 = sshll.u32 %s151_s12, 4  ;;  %s26_s16 = sshll.u32 %s180_s1, 4  ;;  %s18_s13 = int_to_ptr.vmem [resolvable:$true] %s17_s13  ;;  %s27_s16 = int_to_ptr.hbm [resolvable:$true] %s26_s16 }
   0x4   :  { %20 = dma.hbm_to_vmem [thread:$0]  %s16_s11, 128, %s18_s13, [#allocation3]  }
   0x5   :  { %s152_s17 = smov [#allocation5]  }
   0x6   :  { %s28_s18 = sshll.u32 %s152_s17, 4  ;;  %s29_s18 = int_to_ptr.vmem [resolvable:$true] %s28_s18 }
   0x7   :  { %31 = dma.hbm_to_vmem [thread:$0]  %s27_s16, 128, %s29_s18, [#allocation6]  }
   0x8   :  { %145 = dma.done.wait [#allocation3], 128  }
   0x9   :  { %146 = vsyncadd [#allocation3], 4294967168 }
   0xa   :  { %147 = dma.done.wait [#allocation6], 128  }
   0xb   :  { %148 = vsyncadd [#allocation6], 4294967168  ;;  %v41_v0 = vld [vmem:[#allocation5] sm:$0xff]  ;;  %s153_s0 = smov 32   ;;  %vm46_vm0 = vcmask 261120   ;;  %v40_v1 = vld [vmem:[#allocation2] sm:$0xff] }
   0xc   :  { %43 = vrot.lane.b32.xlu0 %v41_v0, %s153_s0  ;;  %s154_s19 = smov [#allocation7]   ;;  %s58_s1 = sshll.u32 %s181_s2, 4  ;;  %vm49_vm1 = vcmask 523264   ;;  %s59_s1 = int_to_ptr.hbm [resolvable:$true] %s58_s1 }
   0xd   :  { %s56_s20 = sshll.u32 %s154_s19, 4  ;;  %s57_s20 = int_to_ptr.vmem [resolvable:$true] %s56_s20 }
  0x7e   :  { %v44_v2 = vpop.permute.xlu0 %43 }
  0x7f   :  { %v47_v3 = vsel %vm46_vm0, %v41_v0, %v44_v2 }
  0x80   :  { %v48_v4 = vadd.f32 %v47_v3, %v40_v1 }
  0x82   :  { %50 = vst.msk [vmem:[#allocation7] sm:$0xff] %vm49_vm1, %v48_v4 }
  0x83   :  { %61 = dma.vmem_to_hbm [thread:$0]  %s57_s20, 128, %s59_s1, [#allocation4]  }
  0x84   :  { %149 = dma.done.wait [#allocation4], 128  }
  0x85   :  { %150 = vsyncadd [#allocation4], 4294967168 }
  0x86   :  { %66 = vsyncpa [#allocation3], 1 }
  0x87   :  { %67 = vsyncpa [#allocation6], 1 }
  0x88   :  { %68 = vsyncpa [#allocation4], 1 }

</bundles_post_ra>
